<compile_context>
chip_gen: v6e
topology: v6e:2x2x1
jax: 0.10.0
libtpu: 0.0.40
codegen_flags: <defaults>
</compile_context>

<pallas_src>
import jax
import jax.numpy as jnp
from jax.experimental import pallas as pl
from jax.experimental.pallas import tpu as pltpu


def _symlog_kernel(x_ref, scale_ref, bias_ref, o_ref):
    x = x_ref[...].astype(jnp.float32)        # (tile_rows, packed_dim)
    mag = jnp.log1p(jnp.abs(x))               # log rides the EUP slot; log1p for accuracy
    signed = jnp.where(x < 0, -mag, mag)      # avoids sign()*... compare/select/mul chain
    y = signed * scale_ref[...] + bias_ref[...]   # scale/bias: (1, packed_dim) broadcast
    o_ref[...] = y.astype(o_ref.dtype)


def symlog(x, scale, bias, *, tile_rows=None, max_tile_bytes=8 * 1024 * 1024):
    """Apply SymLog elementwise. scale/bias broadcast along the last axis of x."""
    orig_shape = x.shape
    dim = orig_shape[-1]
    assert scale.shape == (dim,) and bias.shape == (dim,)

    x2d = x.reshape(-1, dim)
    rows = x2d.shape[0]

    # ---- lane-dense packing: fold k = 128 // dim rows into one 128-lane slab ----
    pack = 1
    if dim < 128 and 128 % dim == 0 and rows % (128 // dim) == 0:
        pack = 128 // dim
    packed_dim = dim * pack
    packed_rows = rows // pack
    if pack > 1:
        x2d = x2d.reshape(packed_rows, packed_dim)

    scale2d = jnp.tile(scale.astype(jnp.float32), pack).reshape(1, packed_dim)
    bias2d = jnp.tile(bias.astype(jnp.float32), pack).reshape(1, packed_dim)

    # ---- tile sizing: as big as the VMEM budget allows, sublane aligned ----
    itemsize = jnp.dtype(x.dtype).itemsize
    sublane = max(8, 32 // itemsize)          # 8 for f32, 16 for bf16, 32 for 8-bit
    if tile_rows is None:
        tile_rows = max(sublane, max_tile_bytes // (packed_dim * itemsize))
    if tile_rows >= packed_rows:
        tr = packed_rows                      # full-extent block is always legal
    else:
        tr = max(sublane, (tile_rows // sublane) * sublane)

    grid = (pl.cdiv(packed_rows, tr),)        # ragged final block handled by Pallas

    out = pl.pallas_call(
        _symlog_kernel,
        out_shape=jax.ShapeDtypeStruct((packed_rows, packed_dim), x.dtype),
        grid_spec=pltpu.PrefetchScalarGridSpec(
            num_scalar_prefetch=0,
            grid=grid,
            in_specs=[
                pl.BlockSpec((tr, packed_dim), lambda i: (i, 0)),
                pl.BlockSpec((1, packed_dim), lambda i: (0, 0)),
                pl.BlockSpec((1, packed_dim), lambda i: (0, 0)),
            ],
            out_specs=pl.BlockSpec((tr, packed_dim), lambda i: (i, 0)),
        ),
        compiler_params=pltpu.CompilerParams(
            dimension_semantics=("parallel",),          # rows shard across TCs on v7x
            vmem_limit_bytes=48 * 1024 * 1024,          # raise v5e 16 MiB cap, safe on v7x
        ),
    )(x2d, scale2d, bias2d)

    return out.reshape(orig_shape)


def _ref_symlog(x, scale, bias):
    xf = x.astype(jnp.float32)
    y = jnp.sign(xf) * jnp.log(jnp.abs(xf) + 1.0) * scale + bias
    return y.astype(x.dtype)


if __name__ == "__main__":
    key = jax.random.PRNGKey(0)

    # Small shapes consistent with a per-feature SymLog: batch=2, seq=8, dim=32.
    B, S, D = 2, 8, 32
    x = jax.random.normal(key, (B, S, D), dtype=jnp.float32) * 3.0

    # Deterministic parameter init matching nn.Parameter(torch.ones/zeros(dim)).
    scale = jnp.ones((D,), dtype=jnp.float32)
    bias = jnp.zeros((D,), dtype=jnp.float32)

    y = symlog(x, scale, bias)
    jax.block_until_ready(y)
    assert y.shape == x.shape and y.dtype == x.dtype
    assert jnp.allclose(y, _ref_symlog(x, scale, bias), atol=1e-5, rtol=1e-5)

    # Extra check 1: row count not divisible by pack factor (fallback, masked lanes).
    x2 = jax.random.normal(jax.random.PRNGKey(1), (3, 5, D), dtype=jnp.float32) * 2.0
    s2 = jax.random.normal(jax.random.PRNGKey(2), (D,), dtype=jnp.float32)
    b2 = jax.random.normal(jax.random.PRNGKey(3), (D,), dtype=jnp.float32)
    y2 = symlog(x2, s2, b2)
    jax.block_until_ready(y2)
    assert jnp.allclose(y2, _ref_symlog(x2, s2, b2), atol=1e-5, rtol=1e-5)

    # Extra check 2: packed layout with a ragged final grid block (multi-step grid).
    x3 = jax.random.normal(jax.random.PRNGKey(4), (2, 50, D), dtype=jnp.float32) * 4.0
    y3 = symlog(x3, s2, b2, tile_rows=8)
    jax.block_until_ready(y3)
    assert jnp.allclose(y3, _ref_symlog(x3, s2, b2), atol=1e-5, rtol=1e-5)

    # Extra check 3: bf16 activations (f32 compute, bf16 I/O).
    x4 = (jax.random.normal(jax.random.PRNGKey(5), (B, S, D), dtype=jnp.float32) * 3.0
          ).astype(jnp.bfloat16)
    y4 = symlog(x4, s2, b2)
    jax.block_until_ready(y4)
    assert y4.dtype == jnp.bfloat16
    assert jnp.allclose(y4.astype(jnp.float32),
                        _ref_symlog(x4, s2, b2).astype(jnp.float32),
                        atol=3e-2, rtol=3e-2)

    print("KERNEL_OK")
</pallas_src>

<mosaic_0001>
module attributes {stable_mosaic.version = 11 : i64} {
  func.func @_symlog_kernel(%arg0: i32, %arg1: memref<4x128xf32, #tpu.memory_space<vmem>>, %arg2: memref<1x128xf32, #tpu.memory_space<vmem>>, %arg3: memref<1x128xf32, #tpu.memory_space<vmem>>, %arg4: memref<4x128xf32, #tpu.memory_space<vmem>>) attributes {dimension_semantics = [#tpu.dimension_semantics<parallel>], iteration_bounds = array<i64: 1>, scalar_prefetch = 0 : i64, scratch_operands = 0 : i64, tpu.core_type = #tpu.core_type<tc>, window_params = [{transform_indices = @transform_0, window_bounds = array<i64: 4, 128>}, {pipeline_mode = #tpu.pipeline_mode<synchronous>, transform_indices = @transform_1, window_bounds = array<i64: 1, 128>}, {pipeline_mode = #tpu.pipeline_mode<synchronous>, transform_indices = @transform_2, window_bounds = array<i64: 1, 128>}, {transform_indices = @transform_3, window_bounds = array<i64: 4, 128>}]} {
    %c0 = arith.constant 0 : index
    %c0_0 = arith.constant 0 : index
    %0 = vector.load %arg1[%c0, %c0_0] : memref<4x128xf32, #tpu.memory_space<vmem>>, vector<4x128xf32>
    %1 = math.absf %0 : vector<4x128xf32>
    %2 = math.log1p %1 : vector<4x128xf32>
    %cst = arith.constant 0.000000e+00 : f32
    %3 = vector.broadcast %cst : f32 to vector<4x128xf32>
    %4 = arith.cmpf olt, %0, %3 : vector<4x128xf32>
    %cst_1 = arith.constant 0.000000e+00 : f32
    %5 = vector.broadcast %cst_1 : f32 to vector<4x128xf32>
    %6 = arith.subf %5, %2 : vector<4x128xf32>
    %7 = arith.select %4, %6, %2 : vector<4x128xi1>, vector<4x128xf32>
    %c0_2 = arith.constant 0 : index
    %c0_3 = arith.constant 0 : index
    %8 = vector.load %arg2[%c0_2, %c0_3] : memref<1x128xf32, #tpu.memory_space<vmem>>, vector<1x128xf32>
    %9 = vector.broadcast %8 : vector<1x128xf32> to vector<4x128xf32>
    %10 = arith.mulf %7, %9 : vector<4x128xf32>
    %c0_4 = arith.constant 0 : index
    %c0_5 = arith.constant 0 : index
    %11 = vector.load %arg3[%c0_4, %c0_5] : memref<1x128xf32, #tpu.memory_space<vmem>>, vector<1x128xf32>
    %12 = vector.broadcast %11 : vector<1x128xf32> to vector<4x128xf32>
    %13 = arith.addf %10, %12 : vector<4x128xf32>
    %c0_6 = arith.constant 0 : index
    %c0_7 = arith.constant 0 : index
    %14 = vector.load %arg4[%c0_6, %c0_7] : memref<4x128xf32, #tpu.memory_space<vmem>>, vector<4x128xf32>
    tpu.vector_store %arg4[%c0_6, %c0_7], %13 {strides = array<i32>} : memref<4x128xf32, #tpu.memory_space<vmem>>, vector<4x128xf32>,
    return
  }
  func.func @transform_0(%arg0: i32) -> (i32, i32) {
    %c0_i32 = arith.constant 0 : i32
    %c0_i32_0 = arith.constant 0 : i32
    return %arg0, %c0_i32 : i32, i32
  }
  func.func @transform_1(%arg0: i32) -> (i32, i32) {
    %c0_i32 = arith.constant 0 : i32
    %c0_i32_0 = arith.constant 0 : i32
    %c0_i32_1 = arith.constant 0 : i32
    return %c0_i32, %c0_i32_0 : i32, i32
  }
  func.func @transform_2(%arg0: i32) -> (i32, i32) {
    %c0_i32 = arith.constant 0 : i32
    %c0_i32_0 = arith.constant 0 : i32
    %c0_i32_1 = arith.constant 0 : i32
    return %c0_i32, %c0_i32_0 : i32, i32
  }
  func.func @transform_3(%arg0: i32) -> (i32, i32) {
    %c0_i32 = arith.constant 0 : i32
    %c0_i32_0 = arith.constant 0 : i32
    return %arg0, %c0_i32 : i32, i32
  }
}

</mosaic_0001>

<bundles_post_ra>
// kernel: tpu_custom_call.1
= control target key start
LH: loop header
LB: loop body
LE: loop exit
PB: predicated region body
PF: predicated region fallthrough
CT: control target
= control target key end

     0   :  { %8 = vsyncpa [#allocation3], 0  ;;  %s157_s0 = inlined_call_operand.hbm [shape: f32[4,128], index: 0, kind: input, shape index: {}]   ;;  %s158_s1 = inlined_call_operand.vmem [shape: f32[1,128], index: 1, kind: input, shape index: {}]   ;;  %s159_s2 = inlined_call_operand.vmem [shape: f32[1,128], index: 2, kind: input, shape index: {}]   ;;  %s160_s3 = inlined_call_operand.hbm [shape: f32[4,128], index: 3, kind: output, shape index: {}]  }
   0x1   :  { %9 = vsyncpa [#allocation4], 0  ;;  %s123_s12 = smov [#allocation2]  }
   0x2   :  { %s16_s13 = sshll.u32 %s123_s12, 4  ;;  %s17_s13 = int_to_ptr.vmem [resolvable:$true] %s16_s13 }
   0x3   :  { %s87_s14 = scalar_lea.vmem %s17_s13, 64  ;;  %p92_p1 = scmp.lt.s32.totalorder %s17_s13, %s17_s13 }
   0x4   :  { %p88_p0 = scmp.ne.s32.totalorder %s17_s13, %s87_s14  ;;  %p93_p2 = scmp.lt.s32.totalorder %s87_s14, %s87_s14 }
   0x6   :  { %p94_p3 = por %p93_p2, %p92_p1 }
   0x8   :  { %p95_p4 = pnand %p94_p3, %p88_p0 }
   0xa   :  { %98 = shalt.err (!%p95_p4)
}
   0xb   :  { %19 = dma.hbm_to_vmem [thread:$0]  %s157_s0, 64, %s17_s13, [#allocation3]  }
   0xc   :  { %119 = dma.done.wait [#allocation3], 64  }
   0xd   :  { %120 = vsyncadd [#allocation3], 4294967232  ;;  %v27_v0 = vld [vmem:[#allocation2] sm:$0xf]  ;;  %s124_s20 = smov [#allocation5]  }
   0xe   :  { %v28_v1 = vand.u32 2147483647, %v27_v0  ;;  %vm38_vm1 = vcmp.lt.f32.partialorder %v27_v0, 0.0  ;;  %v73_v10 = vld [vmem:[%s158_s1] ss:$0 sm:$0xff]  ;;  %s64_s21 = sshll.u32 %s124_s20, 4  ;;  %s65_s21 = int_to_ptr.vmem [resolvable:$true] %s64_s21 }
   0xf   :  { %v74_v12 = vld [vmem:[%s159_s2] ss:$0 sm:$0xff]  ;;  %s99_s22 = scalar_lea.vmem %s65_s21, 64  ;;  %p104_p6 = scmp.lt.s32.totalorder %s65_s21, %s65_s21 }
  0x10   :  { %v29_v2 = vadd.f32 1.0, %v28_v1  ;;  %v32_v3 = vmul.f32 -0.5, %v28_v1  ;;  %vm36_vm0 = vcmp.lt.f32.partialorder %v28_v1, 0.0004427343  ;;  %p100_p5 = scmp.ne.s32.totalorder %s65_s21, %s99_s22  ;;  %p105_p7 = scmp.lt.s32.totalorder %s99_s22, %s99_s22 }
  0x12   :  { %77 = vlog2.f32 %v29_v2  ;;  %v33_v4 = vadd.f32 1.0, %v32_v3  ;;  %p106_p8 = por %p105_p7, %p104_p6 }
  0x14   :  { %v34_v5 = vmul.f32 %v33_v4, %v28_v1  ;;  %p107_p9 = pnand %p106_p8, %p100_p5 }
  0x1f   :  { %v78_v6 = vpop.eup %77 }
  0x20   :  { %v31_v7 = vmul.f32 0.6931472, %v78_v6 }
  0x22   :  { %v37_v8 = vsel %vm36_vm0, %v34_v5, %v31_v7 }
  0x23   :  { %v39_v9 = vsub.f32 0.0, %v37_v8 }
  0x25   :  { %v40_v11 = vsel %vm38_vm1, %v39_v9, %v37_v8 }
  0x26   :  { %v48_v13 = vmul.f32 %v73_v10, %v40_v11 }
  0x28   :  { %v56_v14 = vadd.f32 %v74_v12, %v48_v13 }
  0x2a   :  { %57 = vst [vmem:[#allocation5] sm:$0xf] %v56_v14 }
  0x2b   :  { %110 = shalt.err (!%p107_p9)
}
  0x2c   :  { %67 = dma.vmem_to_hbm [thread:$0]  %s65_s21, 64, %s160_s3, [#allocation4]  }
  0x2d   :  { %121 = dma.done.wait [#allocation4], 64  }
  0x2e   :  { %122 = vsyncadd [#allocation4], 4294967232 }
  0x2f   :  { %71 = vsyncpa [#allocation3], 1 }
  0x30   :  { %72 = vsyncpa [#allocation4], 1 }

</bundles_post_ra>
